<compile_context>
chip_gen: v7x
topology: tpu7x:2x2x1
jax: 0.10.0
libtpu: 0.0.40
codegen_flags: <defaults>
</compile_context>

<pallas_src>
import functools

import jax
import jax.numpy as jnp
from jax.experimental import pallas as pl
from jax.experimental.pallas import tpu as pltpu


def _round_up(x, m):
    return ((x + m - 1) // m) * m


def qnetwork_kernel(x_ref, w1_ref, b1_ref, w2_ref, b2_ref, w3_ref, b3_ref, o_ref):
    """Fused 3-layer MLP forward pass for one batch tile.

    x:  (TB, S)        f32   (cast to bf16 for the MXU)
    w1: (S, 1024)      bf16    b1: (1, 1024)  f32
    w2: (1024, 128)    bf16    b2: (1, 128)   f32
    w3: (128, AP)      bf16    b3: (1, AP)    f32   (AP = A padded to 128 lanes)
    o:  (TB, AP)       f32
    """
    x = x_ref[...].astype(jnp.bfloat16)

    # fc1 + ReLU  (bf16 MXU matmul, f32 accumulate; elementwise math in f32)
    h1 = jnp.dot(x, w1_ref[...], preferred_element_type=jnp.float32) + b1_ref[...]
    h1 = jnp.maximum(h1, 0.0).astype(jnp.bfloat16)

    # fc2 + ReLU
    h2 = jnp.dot(h1, w2_ref[...], preferred_element_type=jnp.float32) + b2_ref[...]
    h2 = jnp.maximum(h2, 0.0).astype(jnp.bfloat16)

    # fc6 (no activation)
    out = jnp.dot(h2, w3_ref[...], preferred_element_type=jnp.float32) + b3_ref[...]
    o_ref[...] = out.astype(o_ref.dtype)


@functools.partial(jax.jit, static_argnames=("batch_tile",))
def qnetwork_forward(x, w1, b1, w2, b2, w3, b3, *, batch_tile=256):
    B, S = x.shape
    H1 = w1.shape[1]
    H2 = w2.shape[1]
    A = w3.shape[1]

    # Lane-dense output path: pad the action dim (and w3/b3) to a multiple of 128.
    AP = _round_up(A, 128)
    if AP != A:
        w3 = jnp.pad(w3, ((0, 0), (0, AP - A)))
        b3 = jnp.pad(b3, ((0, 0), (0, AP - A)))

    # Batch tiling: TB multiple of 8 (sublane), up to `batch_tile` (MXU M fill).
    TB = batch_tile if B >= batch_tile else _round_up(B, 8)
    BP = _round_up(B, TB)
    if BP != B:
        x = jnp.pad(x, ((0, BP - B), (0, 0)))
    nb = BP // TB

    # bf16 weights feed the MXU at native width; biases stay f32 (VPU math in f32).
    w1 = w1.astype(jnp.bfloat16)
    w2 = w2.astype(jnp.bfloat16)
    w3 = w3.astype(jnp.bfloat16)

    out = pl.pallas_call(
        qnetwork_kernel,
        out_shape=jax.ShapeDtypeStruct((BP, AP), jnp.float32),
        grid_spec=pl.GridSpec(
            grid=(nb,),
            in_specs=[
                # activations stream per batch tile
                pl.BlockSpec((TB, S), lambda i: (i, 0)),
                # weights / biases: constant index_map -> fetched once, VMEM-resident
                pl.BlockSpec((S, H1), lambda i: (0, 0)),
                pl.BlockSpec((1, H1), lambda i: (0, 0)),
                pl.BlockSpec((H1, H2), lambda i: (0, 0)),
                pl.BlockSpec((1, H2), lambda i: (0, 0)),
                pl.BlockSpec((H2, AP), lambda i: (0, 0)),
                pl.BlockSpec((1, AP), lambda i: (0, 0)),
            ],
            out_specs=pl.BlockSpec((TB, AP), lambda i: (i, 0)),
        ),
        compiler_params=pltpu.CompilerParams(
            # batch tiles are independent -> megacore sharding on v7x; harmless elsewhere
            dimension_semantics=("parallel",),
        ),
    )(x, w1, b1, w2, b2, w3, b3)

    # Slice away batch / lane padding.
    return out[:B, :A]


def init_params(key, state_size, action_size):
    """Deterministic init mimicking PyTorch nn.Linear default
    (U[-1/sqrt(fan_in), +1/sqrt(fan_in)]). Stored in f32; the wrapper casts
    weights to bf16."""
    dims = [(state_size, 1024), (1024, 128), (128, action_size)]
    params = []
    for (fan_in, fan_out) in dims:
        key, kw, kb = jax.random.split(key, 3)
        bound = 1.0 / jnp.sqrt(fan_in)
        w = jax.random.uniform(kw, (fan_in, fan_out), jnp.float32, -bound, bound)
        b = jax.random.uniform(kb, (1, fan_out), jnp.float32, -bound, bound)
        params.extend([w, b])
    return params


def reference_forward(x, w1, b1, w2, b2, w3, b3):
    """Pure-JAX reference with the same bf16 quantization of weights/activations
    and f32 accumulation, so the comparison stays tight."""
    xb = x.astype(jnp.bfloat16)
    w1b = w1.astype(jnp.bfloat16)
    w2b = w2.astype(jnp.bfloat16)
    w3b = w3.astype(jnp.bfloat16)
    h1 = jnp.maximum(jnp.dot(xb, w1b, preferred_element_type=jnp.float32) + b1, 0.0)
    h1 = h1.astype(jnp.bfloat16)
    h2 = jnp.maximum(jnp.dot(h1, w2b, preferred_element_type=jnp.float32) + b2, 0.0)
    h2 = h2.astype(jnp.bfloat16)
    return jnp.dot(h2, w3b, preferred_element_type=jnp.float32) + b3


if __name__ == "__main__":
    key = jax.random.PRNGKey(0)
    batch, state_size, action_size = 8, 8, 4

    key, kx, kp = jax.random.split(key, 3)
    x = jax.random.normal(kx, (batch, state_size), jnp.float32)
    params = init_params(kp, state_size, action_size)

    out = qnetwork_forward(x, *params)
    out = jax.block_until_ready(out)

    ref = reference_forward(x, *params)
    assert out.shape == (batch, action_size)
    assert jnp.allclose(out, ref, atol=1e-3, rtol=1e-3), "mismatch vs reference"

    print("KERNEL_OK")
</pallas_src>

<mosaic_0001>
module attributes {stable_mosaic.version = 11 : i64} {
  func.func @qnetwork_kernel(%arg0: i32, %arg1: memref<8x8xf32, #tpu.memory_space<vmem>>, %arg2: memref<8x1024xbf16, #tpu.memory_space<vmem>>, %arg3: memref<1x1024xf32, #tpu.memory_space<vmem>>, %arg4: memref<1024x128xbf16, #tpu.memory_space<vmem>>, %arg5: memref<1x128xf32, #tpu.memory_space<vmem>>, %arg6: memref<128x128xbf16, #tpu.memory_space<vmem>>, %arg7: memref<1x128xf32, #tpu.memory_space<vmem>>, %arg8: memref<8x128xf32, #tpu.memory_space<vmem>>) attributes {dimension_semantics = [#tpu.dimension_semantics<parallel>], iteration_bounds = array<i64: 1>, scalar_prefetch = 0 : i64, scratch_operands = 0 : i64, tpu.core_type = #tpu.core_type<tc>, window_params = [{transform_indices = @transform_0, window_bounds = array<i64: 8, 8>}, {pipeline_mode = #tpu.pipeline_mode<synchronous>, transform_indices = @transform_1, window_bounds = array<i64: 8, 1024>}, {pipeline_mode = #tpu.pipeline_mode<synchronous>, transform_indices = @transform_2, window_bounds = array<i64: 1, 1024>}, {pipeline_mode = #tpu.pipeline_mode<synchronous>, transform_indices = @transform_3, window_bounds = array<i64: 1024, 128>}, {pipeline_mode = #tpu.pipeline_mode<synchronous>, transform_indices = @transform_4, window_bounds = array<i64: 1, 128>}, {pipeline_mode = #tpu.pipeline_mode<synchronous>, transform_indices = @transform_5, window_bounds = array<i64: 128, 128>}, {pipeline_mode = #tpu.pipeline_mode<synchronous>, transform_indices = @transform_6, window_bounds = array<i64: 1, 128>}, {transform_indices = @transform_7, window_bounds = array<i64: 8, 128>}]} {
    %c0 = arith.constant 0 : index
    %c0_0 = arith.constant 0 : index
    %0 = vector.load %arg1[%c0, %c0_0] : memref<8x8xf32, #tpu.memory_space<vmem>>, vector<8x8xf32>
    %1 = arith.truncf %0 : vector<8x8xf32> to vector<8x8xbf16>
    %c0_1 = arith.constant 0 : index
    %c0_2 = arith.constant 0 : index
    %2 = vector.load %arg2[%c0_1, %c0_2] : memref<8x1024xbf16, #tpu.memory_space<vmem>>, vector<8x1024xbf16>
    %cst = arith.constant dense<0.000000e+00> : vector<8x1024xf32>
    %3 = tpu.matmul %1, %2, %cst {dimension_numbers = #tpu.dot_dimension_numbers<[1], [0], [0], [1], [0, 0, 1, 1], [], []>} : vector<8x8xbf16>, vector<8x1024xbf16>, vector<8x1024xf32> -> vector<8x1024xf32>
    %c0_3 = arith.constant 0 : index
    %c0_4 = arith.constant 0 : index
    %4 = vector.load %arg3[%c0_3, %c0_4] : memref<1x1024xf32, #tpu.memory_space<vmem>>, vector<1x1024xf32>
    %5 = vector.broadcast %4 : vector<1x1024xf32> to vector<8x1024xf32>
    %6 = arith.addf %3, %5 : vector<8x1024xf32>
    %cst_5 = arith.constant 0.000000e+00 : f32
    %7 = vector.broadcast %cst_5 : f32 to vector<8x1024xf32>
    %8 = arith.maximumf %6, %7 : vector<8x1024xf32>
    %9 = arith.truncf %8 : vector<8x1024xf32> to vector<8x1024xbf16>
    %c0_6 = arith.constant 0 : index
    %c0_7 = arith.constant 0 : index
    %10 = vector.load %arg4[%c0_6, %c0_7] : memref<1024x128xbf16, #tpu.memory_space<vmem>>, vector<1024x128xbf16>
    %cst_8 = arith.constant dense<0.000000e+00> : vector<8x128xf32>
    %11 = tpu.matmul %9, %10, %cst_8 {dimension_numbers = #tpu.dot_dimension_numbers<[1], [0], [0], [1], [0, 0, 1, 1], [], []>} : vector<8x1024xbf16>, vector<1024x128xbf16>, vector<8x128xf32> -> vector<8x128xf32>
    %c0_9 = arith.constant 0 : index
    %c0_10 = arith.constant 0 : index
    %12 = vector.load %arg5[%c0_9, %c0_10] : memref<1x128xf32, #tpu.memory_space<vmem>>, vector<1x128xf32>
    %13 = vector.broadcast %12 : vector<1x128xf32> to vector<8x128xf32>
    %14 = arith.addf %11, %13 : vector<8x128xf32>
    %cst_11 = arith.constant 0.000000e+00 : f32
    %15 = vector.broadcast %cst_11 : f32 to vector<8x128xf32>
    %16 = arith.maximumf %14, %15 : vector<8x128xf32>
    %17 = arith.truncf %16 : vector<8x128xf32> to vector<8x128xbf16>
    %c0_12 = arith.constant 0 : index
    %c0_13 = arith.constant 0 : index
    %18 = vector.load %arg6[%c0_12, %c0_13] : memref<128x128xbf16, #tpu.memory_space<vmem>>, vector<128x128xbf16>
    %cst_14 = arith.constant dense<0.000000e+00> : vector<8x128xf32>
    %19 = tpu.matmul %17, %18, %cst_14 {dimension_numbers = #tpu.dot_dimension_numbers<[1], [0], [0], [1], [0, 0, 1, 1], [], []>} : vector<8x128xbf16>, vector<128x128xbf16>, vector<8x128xf32> -> vector<8x128xf32>
    %c0_15 = arith.constant 0 : index
    %c0_16 = arith.constant 0 : index
    %20 = vector.load %arg7[%c0_15, %c0_16] : memref<1x128xf32, #tpu.memory_space<vmem>>, vector<1x128xf32>
    %21 = vector.broadcast %20 : vector<1x128xf32> to vector<8x128xf32>
    %22 = arith.addf %19, %21 : vector<8x128xf32>
    %c0_17 = arith.constant 0 : index
    %c0_18 = arith.constant 0 : index
    %23 = vector.load %arg8[%c0_17, %c0_18] : memref<8x128xf32, #tpu.memory_space<vmem>>, vector<8x128xf32>
    tpu.vector_store %arg8[%c0_17, %c0_18], %22 {strides = array<i32>} : memref<8x128xf32, #tpu.memory_space<vmem>>, vector<8x128xf32>,
    return
  }
  func.func @transform_0(%arg0: i32) -> (i32, i32) {
    %c0_i32 = arith.constant 0 : i32
    %c0_i32_0 = arith.constant 0 : i32
    return %arg0, %c0_i32 : i32, i32
  }
  func.func @transform_1(%arg0: i32) -> (i32, i32) {
    %c0_i32 = arith.constant 0 : i32
    %c0_i32_0 = arith.constant 0 : i32
    %c0_i32_1 = arith.constant 0 : i32
    return %c0_i32, %c0_i32_0 : i32, i32
  }
  func.func @transform_2(%arg0: i32) -> (i32, i32) {
    %c0_i32 = arith.constant 0 : i32
    %c0_i32_0 = arith.constant 0 : i32
    %c0_i32_1 = arith.constant 0 : i32
    return %c0_i32, %c0_i32_0 : i32, i32
  }
  func.func @transform_3(%arg0: i32) -> (i32, i32) {
    %c0_i32 = arith.constant 0 : i32
    %c0_i32_0 = arith.constant 0 : i32
    %c0_i32_1 = arith.constant 0 : i32
    return %c0_i32, %c0_i32_0 : i32, i32
  }
  func.func @transform_4(%arg0: i32) -> (i32, i32) {
    %c0_i32 = arith.constant 0 : i32
    %c0_i32_0 = arith.constant 0 : i32
    %c0_i32_1 = arith.constant 0 : i32
    return %c0_i32, %c0_i32_0 : i32, i32
  }
  func.func @transform_5(%arg0: i32) -> (i32, i32) {
    %c0_i32 = arith.constant 0 : i32
    %c0_i32_0 = arith.constant 0 : i32
    %c0_i32_1 = arith.constant 0 : i32
    return %c0_i32, %c0_i32_0 : i32, i32
  }
  func.func @transform_6(%arg0: i32) -> (i32, i32) {
    %c0_i32 = arith.constant 0 : i32
    %c0_i32_0 = arith.constant 0 : i32
    %c0_i32_1 = arith.constant 0 : i32
    return %c0_i32, %c0_i32_0 : i32, i32
  }
  func.func @transform_7(%arg0: i32) -> (i32, i32) {
    %c0_i32 = arith.constant 0 : i32
    %c0_i32_0 = arith.constant 0 : i32
    return %arg0, %c0_i32 : i32, i32
  }
}

</mosaic_0001>

<bundles_post_ra>
// kernel: qnetwork_forward.1
= control target key start
LH: loop header
LB: loop body
LE: loop exit
PB: predicated region body
PF: predicated region fallthrough
CT: control target
= control target key end

     0   :  { %vm99_vm0 = vcmask 1043456   ;;  %v1391_v1 = vmov 0   ;;  %vm95_vm1 = vcmask 64512   ;;  %v35_v53 = vlaneseq  ;;  %s1709_s1 = inlined_call_operand.vmem [shape: bf16[8,1024], index: 1, kind: input, shape index: {}]   ;;  %s1710_s0 = inlined_call_operand.vmem [shape: f32[8,8], index: 0, kind: input, shape index: {}]   ;;  %s1711_s3 = inlined_call_operand.vmem [shape: bf16[1024,128], index: 3, kind: input, shape index: {}]   ;;  %s1712_s2 = inlined_call_operand.vmem [shape: f32[1,1024], index: 2, kind: input, shape index: {}]   ;;  %s1713_s5 = inlined_call_operand.vmem [shape: bf16[128,128], index: 5, kind: input, shape index: {}]   ;;  %s1714_s4 = inlined_call_operand.vmem [shape: f32[1,128], index: 4, kind: input, shape index: {}]   ;;  %s1715_s6 = inlined_call_operand.vmem [shape: f32[1,128], index: 6, kind: input, shape index: {}]   ;;  %s1716_s7 = inlined_call_operand.vmem [shape: f32[8,128], index: 7, kind: output, shape index: {}]  }
   0x1   :  { %v29_v0 = vld [vmem:[%s1709_s1] sm:$0xff]  ;;  %156 = vmatprep.mubr.bf16.mxu1 %v1391_v1  ;;  %v30_v3 = vld [vmem:[%s1709_s1 + $0x8] sm:$0xff]  ;;  %v31_v7 = vld [vmem:[%s1709_s1 + $0x10] sm:$0xff]  ;;  %vm1393_vm2 = vmmov 0  }
   0x2   :  { %v27_v2 = vld [vmem:[%s1710_s0] sm:$0xff]  ;;  %v1102_v4 = vcombine.high %v29_v0, %v29_v0  ;;  %v1101_v5 = vcombine.low %v29_v0, %v29_v0  ;;  %v1104_v6 = vcombine.high %v30_v3, %v30_v3  ;;  %v1103_v8 = vcombine.low %v30_v3, %v30_v3  ;;  %v1321_v13 = vld [vmem:[%s1711_s3 + $0x48] sm:$0xff]   ;;  %v1323_v17 = vld [vmem:[%s1711_s3 + $0x50] sm:$0xff]  }
   0x3   :  { %v1319_v9 = vld [vmem:[%s1711_s3 + $0x40] sm:$0xff]   ;;  %v28_v11 = vpack.c.bf16 %v27_v2, %v27_v2  ;;  %v1322_v14 = vld [vmem:[%s1711_s3 + $0x8] sm:$0xff]   ;;  %v1106_v16 = vcombine.high %v31_v7, %v31_v7  ;;  %v32_v18 = vld [vmem:[%s1709_s1 + $0x18] sm:$0xff]  ;;  %v1105_v19 = vcombine.low %v31_v7, %v31_v7  ;;  %v1563_v54 = vshrl.u32 %v35_v53, 7 }
   0x4   :  { %1109 = vmatprep.subr.msk.bf16.mxu1 %vm99_vm0, %v1102_v4  ;;  %v101_v10 = vsel %vm99_vm0, %v1101_v5, 0  ;;  %v1320_v12 = vld [vmem:[%s1711_s3] sm:$0xff]   ;;  %1191 = vmatprep.subr.bf16.mxu0 %v1319_v9  ;;  %v107_v15 = vsel %vm99_vm0, %v1103_v8, 0  ;;  %v1325_v20 = vld [vmem:[%s1711_s3 + $0x10] sm:$0xff]   ;;  %v1327_v21 = vld [vmem:[%s1711_s3 + $0x58] sm:$0xff]   ;;  %v1108_v23 = vcombine.high %v32_v18, %v32_v18  ;;  %v1107_v26 = vcombine.low %v32_v18, %v32_v18 }
   0x5   :  { %125 = vmatpush1.bf16.msra.mxu1 %v101_v10  ;;  %1192 = vmatpush3.bf16.msra.mxu0 %v1320_v12  ;;  %v113_v22 = vsel %vm99_vm0, %v1105_v19, 0  ;;  %v1329_v24 = vld [vmem:[%s1711_s3 + $0x18] sm:$0xff]   ;;  %v1331_v25 = vld [vmem:[%s1711_s3 + $0x60] sm:$0xff]   ;;  %v1335_v28 = vld [vmem:[%s1711_s3 + $0x68] sm:$0xff]   ;;  %v37_v55 = vsub.s32 0, %v1563_v54  ;;  %v41_v57 = vsub.s32 1, %v1563_v54 }
   0x6   :  { %1111 = vmatprep.subr.msk.bf16.mxu1 %vm99_vm0, %v1104_v6  ;;  %1193 = vmatprep.subr.bf16.mxu0 %v1321_v13  ;;  %v1333_v27 = vld [vmem:[%s1711_s3 + $0x20] sm:$0xff]   ;;  %v119_v29 = vsel %vm99_vm0, %v1107_v26, 0  ;;  %v1337_v31 = vld [vmem:[%s1711_s3 + $0x28] sm:$0xff]   ;;  %v1332_v35 = vld [vmem:[%s1711_s3 + $0xd0] sm:$0xff]   ;;  %v45_v63 = vsub.s32 2, %v1563_v54  ;;  %v49_v2 = vsub.s32 3, %v1563_v54 }
   0x7   :  { %v1324_v30 = vld [vmem:[%s1711_s3 + $0xc0] sm:$0xff]   ;;  %v1328_v33 = vld [vmem:[%s1711_s3 + $0xc8] sm:$0xff]   ;;  %v1334_v36 = vld [vmem:[%s1711_s3 + $0x90] sm:$0xff]   ;;  %v57_v18 = vsub.s32 5, %v1563_v54 }
   0x8   :  { %1110 = vmatmul.mubr.msk.bf16.vlgmr.msra.gmra.mrb[0].mxu1 %vm95_vm1, %v28_v11  ;;  %v1326_v32 = vld [vmem:[%s1711_s3 + $0x80] sm:$0xff]   ;;  %v1330_v34 = vld [vmem:[%s1711_s3 + $0x88] sm:$0xff]   ;;  %v1336_v37 = vld [vmem:[%s1711_s3 + $0xd8] sm:$0xff]  }
   0x9   :  { %166 = vmatpush1.bf16.msra.mxu1 %v107_v15  ;;  %197 = vmatprep.mubr.bf16.mxu1 %v1391_v1  ;;  %v1338_v38 = vld [vmem:[%s1711_s3 + $0x98] sm:$0xff]   ;;  %v1339_v39 = vld [vmem:[%s1711_s3 + $0x70] sm:$0xff]   ;;  %v1340_v40 = vld [vmem:[%s1711_s3 + $0xe0] sm:$0xff]  }
   0xa   :  { %1113 = vmatprep.subr.msk.bf16.mxu1 %vm99_vm0, %v1106_v16  ;;  %1194 = vmatpush3.bf16.msra.mxu0 %v1322_v14  ;;  %v1341_v41 = vld [vmem:[%s1711_s3 + $0x30] sm:$0xff]   ;;  %v1342_v42 = vld [vmem:[%s1711_s3 + $0xa0] sm:$0xff]   ;;  %v1343_v43 = vld [vmem:[%s1711_s3 + $0x78] sm:$0xff]  }
   0xb   :  { %1195 = vmatprep.subr.bf16.mxu0 %v1323_v17  ;;  %v1344_v44 = vld [vmem:[%s1711_s3 + $0xe8] sm:$0xff]   ;;  %v1345_v45 = vld [vmem:[%s1711_s3 + $0x38] sm:$0xff]   ;;  %v1347_v47 = vld [vmem:[%s1711_s3 + $0xf0] sm:$0xff]  }
   0xc   :  { %v1346_v46 = vld [vmem:[%s1711_s3 + $0xa8] sm:$0xff]   ;;  %v1348_v48 = vld [vmem:[%s1711_s3 + $0x140] sm:$0xff]   ;;  %v1349_v49 = vld [vmem:[%s1711_s3 + $0xb0] sm:$0xff]  }
   0xd   :  { %v1351_v50 = vld [vmem:[%s1711_s3 + $0xf8] sm:$0xff]   ;;  %v1356_v52 = vld [vmem:[%s1711_s3 + $0x1c0] sm:$0xff]   ;;  %v1354_v17 = vld [vmem:[%s1711_s3 + $0x108] sm:$0xff]  }
   0xe   :  { %1196 = vmatpush3.bf16.msra.mxu0 %v1325_v20  ;;  %v1353_v51 = vld [vmem:[%s1711_s3 + $0xb8] sm:$0xff]   ;;  %v1569_v56 = vld [vmem:[%s1712_s2] sm:$0xff] }
   0xf   :  { %1197 = vmatprep.subr.bf16.mxu0 %v1327_v21  ;;  %v38_v58 = vrot.slane %v1569_v56, %v37_v55  ;;  %v42_v59 = vrot.slane %v1569_v56, %v41_v57  ;;  %v46_v6 = vrot.slane %v1569_v56, %v45_v63  ;;  %v50_v8 = vrot.slane %v1569_v56, %v49_v2  ;;  %v1350_v9 = vld [vmem:[%s1711_s3 + $0x100] sm:$0xff]   ;;  %v1355_v21 = vld [vmem:[%s1711_s3 + $0x150] sm:$0xff]   ;;  %v1376_v2 = vld [vmem:[%s1711_s3 + $0x1e8] sm:$0xff]  }
  0x10   :  { %1112 = vmatmul.mubr.msk.bf16.vlgmr.msra.gmra.mrb[4].mxu1 %vm95_vm1, %v28_v11  ;;  %v58_v26 = vrot.slane %v1569_v56, %v57_v18  ;;  %v1371_v57 = vld [vmem:[%s1711_s3 + $0x170] sm:$0xff]   ;;  %v1386_v18 = vld [vmem:[%s1713_s5 + $0x18] sm:$0xff]  }
  0x11   :  { %207 = vmatpush1.bf16.msra.mxu1 %v113_v22  ;;  %238 = vmatprep.mubr.bf16.mxu1 %v1391_v1 }
  0x12   :  { %1115 = vmatprep.subr.msk.bf16.mxu1 %vm99_vm0, %v1108_v23  ;;  %1198 = vmatpush3.bf16.msra.mxu0 %v1329_v24  ;;  %v1357_v24 = vld [vmem:[%s1711_s3 + $0x110] sm:$0xff]  }
  0x13   :  { %1199 = vmatprep.subr.bf16.mxu0 %v1331_v25  ;;  %v1358_v25 = vld [vmem:[%s1711_s3 + $0x180] sm:$0xff]  }
  0x16   :  { %1200 = vmatpush3.bf16.msra.mxu0 %v1333_v27 }
  0x17   :  { %1201 = vmatprep.subr.bf16.mxu0 %v1335_v28  ;;  %v1359_v28 = vld [vmem:[%s1711_s3 + $0x158] sm:$0xff]  }
  0x18   :  { %1114 = vmatmul.mubr.msk.bf16.vlgmr.msra.gmra.mrb[8].mxu1 %vm95_vm1, %v28_v11 }
  0x19   :  { %248 = vmatpush1.bf16.msra.mxu1 %v119_v29  ;;  %279 = vmatprep.mubr.bf16.mxu1 %v1391_v1  ;;  %v1360_v29 = vld [vmem:[%s1711_s3 + $0x1c8] sm:$0xff]  }
  0x1a   :  { %1213 = vmatprep.subr.bf16.mxu1 %v1324_v30  ;;  %1202 = vmatpush3.bf16.msra.mxu0 %v1337_v31 }
  0x1b   :  { %1203 = vmatprep.subr.bf16.mxu0 %v1339_v39 }
  0x1e   :  { %1204 = vmatpush3.bf16.msra.mxu0 %v1341_v41  ;;  %v1365_v41 = vld [vmem:[%s1711_s3 + $0x120] sm:$0xff]  }
  0x1f   :  { %1205 = vmatprep.subr.bf16.mxu0 %v1343_v43 }
  0x20   :  { %1116 = vmatmul.mubr.msk.bf16.vlgmr.msra.gmra.mrb[12].mxu1 %vm95_vm1, %v28_v11  ;;  %v1352_v11 = vld [vmem:[%s1711_s3 + $0x148] sm:$0xff]  }
  0x21   :  { %1214 = vmatpush3.bf16.msra.mxu1 %v1326_v32  ;;  %v1361_v32 = vld [vmem:[%s1711_s3 + $0x118] sm:$0xff]  }
  0x22   :  { %1215 = vmatprep.subr.bf16.mxu1 %v1328_v33  ;;  %1206 = vmatpush3.bf16.msra.mxu0 %v1345_v45  ;;  %v1362_v33 = vld [vmem:[%s1711_s3 + $0x188] sm:$0xff]  }
  0x23   :  { %1235 = vmatprep.subr.bf16.mxu0 %v1348_v48  ;;  %v1367_v45 = vld [vmem:[%s1711_s3 + $0x168] sm:$0xff]  }
  0x25   :  { %1216 = vmatpush3.bf16.msra.mxu1 %v1330_v34 }
  0x26   :  { %1217 = vmatprep.subr.bf16.mxu1 %v1332_v35 }
  0x29   :  { %1218 = vmatpush3.bf16.msra.mxu1 %v1334_v36  ;;  %v65_v36 = vsub.s32 7, %v1563_v54 }
  0x2a   :  { %1219 = vmatprep.subr.bf16.mxu1 %v1336_v37  ;;  %v1363_v37 = vld [vmem:[%s1711_s3 + $0x160] sm:$0xff]  }
  0x2d   :  { %1220 = vmatpush3.bf16.msra.mxu1 %v1338_v38  ;;  %v1364_v38 = vld [vmem:[%s1711_s3 + $0x1d0] sm:$0xff]  }
  0x2e   :  { %1221 = vmatprep.subr.bf16.mxu1 %v1340_v40 }
  0x31   :  { %1222 = vmatpush3.bf16.msra.mxu1 %v1342_v42  ;;  %v1366_v42 = vld [vmem:[%s1711_s3 + $0x190] sm:$0xff]  }
  0x32   :  { %1223 = vmatprep.subr.bf16.mxu1 %v1344_v44  ;;  %v66_v44 = vrot.slane %v1569_v56, %v65_v36 }
  0x35   :  { %1224 = vmatpush3.bf16.msra.mxu1 %v1346_v46  ;;  %v1368_v46 = vld [vmem:[%s1711_s3 + $0x1d8] sm:$0xff]  }
  0x36   :  { %1225 = vmatprep.subr.bf16.mxu1 %v1347_v47  ;;  %v53_v47 = vsub.s32 4, %v1563_v54 }
  0x38   :  { %v54_v55 = vrot.slane %v1569_v56, %v53_v47 }
  0x39   :  { %1226 = vmatpush3.bf16.msra.mxu1 %v1349_v49 }
  0x3a   :  { %1227 = vmatprep.subr.bf16.mxu1 %v1351_v50  ;;  %v1369_v50 = vld [vmem:[%s1711_s3 + $0x128] sm:$0xff]  }
  0x3d   :  { %1228 = vmatpush3.bf16.msra.mxu1 %v1353_v51  ;;  %v1370_v51 = vld [vmem:[%s1711_s3 + $0x198] sm:$0xff]  }
  0x3e   :  { %1257 = vmatprep.subr.bf16.mxu1 %v1356_v52 }
  0xdb   :  { %v158_v60 = vpop.f32.mrb[0].mxu1 }
  0xdc   :  { %v159_v61 = vadd.f32 %v158_v60, %v38_v58  ;;  %v160_v62 = vpop.f32.mrb[1].mxu1  ;;  %v1372_v58 = vld [vmem:[%s1711_s3 + $0x1e0] sm:$0xff]  }
  0xdd   :  { %v161_v0 = vadd.f32 %v160_v62, %v42_v59  ;;  %v162_v1 = vpop.f32.mrb[2].mxu1  ;;  %v1374_v62 = vld [vmem:[%s1711_s3 + $0x1a0] sm:$0xff]  }
  0xde   :  { %v288_v3 = vmax.f32 %v159_v61, 0.0  ;;  %v163_v4 = vpop.f32.mrb[3].mxu1  ;;  %v1373_v61 = vld [vmem:[%s1711_s3 + $0x130] sm:$0xff]   ;;  %v1375_v1 = vld [vmem:[%s1711_s3 + $0x178] sm:$0xff]  }
  0xdf   :  { %v289_v5 = vmax.f32 %v161_v0, 0.0  ;;  %v1377_v4 = vld [vmem:[%s1711_s3 + $0x138] sm:$0xff]  }
  0xe0   :  { %v296_v10 = vpack.c.bf16 %v288_v3, %v288_v3  ;;  %v61_v3 = vsub.s32 6, %v1563_v54  ;;  %v1379_v54 = vld [vmem:[%s1711_s3 + $0x1f0] sm:$0xff]  }
  0xe1   :  { %v297_v7 = vpack.c.bf16 %v289_v5, %v289_v5  ;;  %v1378_v5 = vld [vmem:[%s1711_s3 + $0x1a8] sm:$0xff]  }
  0xe3   :  { %v199_v12 = vpop.f32.mrb[4].mxu1  ;;  %855 = vmatprep.mubr.bf16.mxu0 %v297_v7  ;;  %v62_v7 = vrot.slane %v1569_v56, %v61_v3  ;;  %v1382_v56 = vld [vmem:[%s1711_s3 + $0x1b8] sm:$0xff]  }
  0xe4   :  { %v200_v13 = vadd.f32 %v199_v12, %v46_v6  ;;  %v201_v14 = vpop.f32.mrb[5].mxu1  ;;  %856 = vmatmul.mubr.bf16.vlgmr.msra.gmra.mrb[0].mxu0 %v296_v10 }
  0xe5   :  { %v202_v15 = vadd.f32 %v201_v14, %v50_v8  ;;  %1236 = vmatpush3.bf16.msra.mxu0 %v1350_v9  ;;  %v203_v16 = vpop.f32.mrb[6].mxu1  ;;  %v1380_v8 = vld [vmem:[%s1711_s3 + $0x1b0] sm:$0xff]   ;;  %v1392_v14 = vmov 0.0  }
  0xe6   :  { %v290_v19 = vmax.f32 %v200_v13, 0.0  ;;  %v204_v20 = vpop.f32.mrb[7].mxu1  ;;  %1237 = vmatprep.subr.bf16.mxu0 %v1352_v11  ;;  %v1381_v11 = vld [vmem:[%s1711_s3 + $0x1f8] sm:$0xff]   ;;  %v1384_v16 = vld [vmem:[%s1713_s5 + $0x8] sm:$0xff]  }
  0xe7   :  { %v291_v22 = vmax.f32 %v202_v15, 0.0  ;;  %v1383_v15 = vld [vmem:[%s1713_s5] sm:$0xff]   ;;  %v1388_v20 = vld [vmem:[%s1713_s5 + $0x28] sm:$0xff]  }
  0xe8   :  { %v298_v27 = vpack.c.bf16 %v290_v19, %v290_v19  ;;  %v1387_v19 = vld [vmem:[%s1713_s5 + $0x20] sm:$0xff]  }
  0xe9   :  { %v299_v23 = vpack.c.bf16 %v291_v22, %v291_v22  ;;  %1238 = vmatpush3.bf16.msra.mxu0 %v1354_v17  ;;  %v1385_v17 = vld [vmem:[%s1713_s5 + $0x10] sm:$0xff]   ;;  %v1390_v22 = vld [vmem:[%s1713_s5 + $0x38] sm:$0xff]  }
  0xea   :  { %1239 = vmatprep.subr.bf16.mxu0 %v1355_v21  ;;  %v1389_v21 = vld [vmem:[%s1713_s5 + $0x30] sm:$0xff]  }
  0xeb   :  { %895 = vmatprep.mubr.bf16.mxu1 %v299_v23  ;;  %v240_v30 = vpop.f32.mrb[8].mxu1 }
  0xec   :  { %896 = vmatmul.mubr.bf16.vlgmr.msra.gmra.mrb[16].mxu1 %v298_v27  ;;  %v242_v31 = vpop.f32.mrb[9].mxu1  ;;  %v241_v0 = vadd.f32 %v240_v30, %v54_v55 }
  0xed   :  { %1240 = vmatpush3.bf16.msra.mxu0 %v1357_v24  ;;  %1258 = vmatpush3.bf16.msra.mxu1 %v1358_v25  ;;  %v243_v34 = vadd.f32 %v242_v31, %v58_v26  ;;  %v244_v35 = vpop.f32.mrb[10].mxu1 }
  0xee   :  { %1241 = vmatprep.subr.bf16.mxu0 %v1359_v28  ;;  %1259 = vmatprep.subr.bf16.mxu1 %v1360_v29  ;;  %v245_v39 = vpop.f32.mrb[11].mxu1  ;;  %v292_v6 = vmax.f32 %v241_v0, 0.0  ;;  %v1117_v28 = vld [vmem:[%s1714_s4] ss:$0 sm:$0xff] }
  0xef   :  { %v293_v40 = vmax.f32 %v243_v34, 0.0 }
  0xf0   :  { %v300_v9 = vpack.c.bf16 %v292_v6, %v292_v6 }
  0xf1   :  { %1242 = vmatpush3.bf16.msra.mxu0 %v1361_v32  ;;  %1260 = vmatpush3.bf16.msra.mxu1 %v1362_v33  ;;  %v301_v43 = vpack.c.bf16 %v293_v40, %v293_v40 }
  0xf2   :  { %1243 = vmatprep.subr.bf16.mxu0 %v1363_v37  ;;  %1261 = vmatprep.subr.bf16.mxu1 %v1364_v38 }
  0xf3   :  { %v281_v48 = vpop.f32.mrb[12].mxu1  ;;  %935 = vmatprep.mubr.bf16.mxu0 %v301_v43 }
  0xf4   :  { %v283_v49 = vpop.f32.mrb[13].mxu1  ;;  %v282_v10 = vadd.f32 %v281_v48, %v62_v7 }
  0xf5   :  { %1244 = vmatpush3.bf16.msra.mxu0 %v1365_v41  ;;  %1262 = vmatpush3.bf16.msra.mxu1 %v1366_v42  ;;  %v284_v52 = vadd.f32 %v283_v49, %v66_v44  ;;  %v285_v53 = vpop.f32.mrb[14].mxu1 }
  0xf6   :  { %1245 = vmatprep.subr.bf16.mxu0 %v1367_v45  ;;  %1263 = vmatprep.subr.bf16.mxu1 %v1368_v46  ;;  %v286_v59 = vpop.f32.mrb[15].mxu1  ;;  %v294_v12 = vmax.f32 %v282_v10, 0.0 }
  0xf7   :  { %v295_v60 = vmax.f32 %v284_v52, 0.0 }
  0xf8   :  { %v302_v13 = vpack.c.bf16 %v294_v12, %v294_v12 }
  0xf9   :  { %1246 = vmatpush3.bf16.msra.mxu0 %v1369_v50  ;;  %1264 = vmatpush3.bf16.msra.mxu1 %v1370_v51  ;;  %v303_v63 = vpack.c.bf16 %v295_v60, %v295_v60  ;;  %v1182_v50 = vld [vmem:[%s1715_s6] ss:$0 sm:$0xff] }
  0xfa   :  { %1247 = vmatprep.subr.bf16.mxu0 %v1371_v57  ;;  %1265 = vmatprep.subr.bf16.mxu1 %v1372_v58 }
  0xfb   :  { %975 = vmatprep.mubr.bf16.mxu1 %v303_v63 }
  0xfd   :  { %1248 = vmatpush3.bf16.msra.mxu0 %v1373_v61  ;;  %1266 = vmatpush3.bf16.msra.mxu1 %v1374_v62 }
  0xfe   :  { %1249 = vmatprep.subr.bf16.mxu0 %v1375_v1  ;;  %1267 = vmatprep.subr.bf16.mxu1 %v1376_v2 }
 0x101   :  { %1250 = vmatpush3.bf16.msra.mxu0 %v1377_v4  ;;  %1268 = vmatpush3.bf16.msra.mxu1 %v1378_v5 }
 0x102   :  { %1269 = vmatprep.subr.bf16.mxu1 %v1379_v54  ;;  %1288 = vmatprep.subr.bf16.mxu0 %v1392_v14 }
 0x104   :  { %936 = vmatmul.mubr.bf16.vlgmr.msra.gmra.mrb[4].mxu0 %v300_v9 }
 0x105   :  { %1270 = vmatpush3.bf16.msra.mxu1 %v1380_v8  ;;  %1289 = vmatpush3.bf16.msra.mxu0 %v1383_v15 }
 0x106   :  { %1271 = vmatprep.subr.bf16.mxu1 %v1381_v11  ;;  %1290 = vmatprep.subr.bf16.mxu0 %v1392_v14 }
 0x107   :  { %1304 = vmatprep.mubr.msk.bf16.mxu0 %vm1393_vm2, %v1392_v14 }
 0x109   :  { %1272 = vmatpush3.bf16.msra.mxu1 %v1382_v56  ;;  %1291 = vmatpush3.bf16.msra.mxu0 %v1384_v16 }
 0x10a   :  { %1292 = vmatprep.subr.bf16.mxu0 %v1392_v14 }
 0x10c   :  { %976 = vmatmul.mubr.bf16.vlgmr.msra.gmra.mrb[20].mxu1 %v302_v13 }
 0x10d   :  { %1293 = vmatpush3.bf16.msra.mxu0 %v1385_v17 }
 0x10e   :  { %1294 = vmatprep.subr.bf16.mxu0 %v1392_v14 }
 0x111   :  { %1295 = vmatpush3.bf16.msra.mxu0 %v1386_v18 }
 0x112   :  { %1296 = vmatprep.subr.bf16.mxu0 %v1392_v14 }
 0x115   :  { %1297 = vmatpush3.bf16.msra.mxu0 %v1387_v19 }
 0x116   :  { %1298 = vmatprep.subr.bf16.mxu0 %v1392_v14 }
 0x119   :  { %1299 = vmatpush3.bf16.msra.mxu0 %v1388_v20 }
 0x11a   :  { %1300 = vmatprep.subr.bf16.mxu0 %v1392_v14 }
 0x11d   :  { %1301 = vmatpush3.bf16.msra.mxu0 %v1389_v21 }
 0x11e   :  { %1302 = vmatprep.subr.bf16.mxu0 %v1392_v14 }
 0x121   :  { %1303 = vmatpush3.bf16.msra.mxu0 %v1390_v22 }
 0x1b7   :  { %v1207_v23 = vpop.f32.mrb[0].mxu0 }
 0x1b8   :  { %v1208_v24 = vpop.f32.mrb[1].mxu0 }
 0x1b9   :  { %v1209_v25 = vadd.f32 %v1208_v24, %v1207_v23  ;;  %v1210_v26 = vpop.f32.mrb[2].mxu0 }
 0x1ba   :  { %v1211_v27 = vpop.f32.mrb[3].mxu0 }
 0x1bb   :  { %v858_v31 = vadd.f32 %v1209_v25, %v1117_v28 }
 0x1bf   :  { %v1229_v29 = vpop.f32.mrb[16].mxu1 }
 0x1c0   :  { %v1230_v30 = vpop.f32.mrb[17].mxu1 }
 0x1c1   :  { %v1231_v32 = vadd.f32 %v1230_v30, %v1229_v29  ;;  %v1232_v33 = vpop.f32.mrb[18].mxu1 }
 0x1c2   :  { %v1233_v34 = vpop.f32.mrb[19].mxu1 }
 0x1c3   :  { %v898_v35 = vadd.f32 %v1231_v32, %v858_v31 }
 0x1d7   :  { %v1251_v36 = vpop.f32.mrb[4].mxu0 }
 0x1d8   :  { %v1252_v37 = vpop.f32.mrb[5].mxu0 }
 0x1d9   :  { %v1253_v38 = vadd.f32 %v1252_v37, %v1251_v36  ;;  %v1254_v39 = vpop.f32.mrb[6].mxu0 }
 0x1da   :  { %v1255_v40 = vpop.f32.mrb[7].mxu0 }
 0x1db   :  { %v938_v41 = vadd.f32 %v1253_v38, %v898_v35 }
 0x1df   :  { %v1273_v42 = vpop.f32.mrb[20].mxu1 }
 0x1e0   :  { %v1274_v43 = vpop.f32.mrb[21].mxu1 }
 0x1e1   :  { %v1275_v44 = vadd.f32 %v1274_v43, %v1273_v42  ;;  %v1276_v45 = vpop.f32.mrb[22].mxu1 }
 0x1e2   :  { %v1277_v46 = vpop.f32.mrb[23].mxu1 }
 0x1e3   :  { %v978_v47 = vadd.f32 %v1275_v44, %v938_v41 }
 0x1e5   :  { %v983_v48 = vmax.f32 %v978_v47, 0.0 }
 0x1e7   :  { %v984_v49 = vpack.c.bf16 %v983_v48, %v983_v48 }
 0x1e9   :  { %1305 = vmatmul.mubr.bf16.vlgmr.msra.gmra.mrb[8].mxu0 %v984_v49 }
 0x2bc   :  { %v1090_v51 = vpop.f32.mrb[8].mxu0 }
 0x2bd   :  { %v1091_v52 = vadd.f32 %v1182_v50, %v1090_v51  ;;  %v1306_v53 = vpop.f32.mrb[9].mxu0 }
 0x2be   :  { %v1093_v55 = vpop.f32.mrb[10].mxu0 }
 0x2bf   :  { %1096 = vst [vmem:[%s1716_s7] sm:$0xff] %v1091_v52  ;;  %v1307_v57 = vpop.f32.mrb[11].mxu0 }

</bundles_post_ra>
